<compile_context>
chip_gen: v6e
topology: v6e:2x2x1
jax: 0.10.0
libtpu: 0.0.40
codegen_flags: <defaults>
</compile_context>

<pallas_src>
import jax
import jax.numpy as jnp
from jax import lax
from jax.experimental import pallas as pl
from jax.experimental.pallas import tpu as pltpu

_MIB = 1024 * 1024


def _fusion_kernel(txt_ref, map_ref, mask_ref, wc_ref, bc_ref, out_ref):
    # txt_ref : [C, 1]  f32       per-batch tex_linear output (precomputed in wrapper)
    # map_ref : [C, S]  io-dtype  spatial tile of the NCHW feature map
    # mask_ref: [1, S]  io-dtype  spatial tile of the mask
    # wc_ref  : [C, C]  f32       1x1 conv weight, [C_out, C_in] (native PyTorch layout)
    # bc_ref  : [C, 1]  f32       conv bias
    m = map_ref[...].astype(jnp.float32)
    # 1x1 conv == channel matmul on the MXU: [C_out, C_in] @ [C_in, S], f32 accumulation.
    vis = jnp.dot(wc_ref[...], m, preferred_element_type=jnp.float32) + bc_ref[...]
    prod = txt_ref[...] * vis                                       # [C, S]
    # F.normalize(dim=channel): x / max(||x||_2, 1e-12) == x * rsqrt(max(ss, 1e-24)).
    # NOTE: in a padded tail tile the garbage columns may produce Inf/NaN here; that is
    # intentional/safe — those lanes are outside the array and never reach HBM.
    ss = jnp.sum(prod * prod, axis=0, keepdims=True)                # [1, S]
    # Reassociated epilogue: combine the two [1,S] factors before the [C,S] multiply.
    scale = lax.rsqrt(jnp.maximum(ss, 1e-24)) * mask_ref[...].astype(jnp.float32)
    out_ref[...] = (prod * scale).astype(out_ref.dtype)


def _round_up(x, m):
    return (x + m - 1) // m * m


def _block_bytes(rows, cols, dtype):
    """VMEM bytes of one buffered block, including sublane/lane padding."""
    its = jnp.dtype(dtype).itemsize
    sublane = max(1, 32 // its)          # 8 for f32, 16 for bf16
    return _round_up(rows, sublane) * _round_up(cols, 128) * its


def _physical_vmem_bytes():
    try:
        cap = getattr(pltpu.get_tpu_info(), "vmem_capacity_bytes", None)
        if cap:
            return int(cap)
    except Exception:
        pass
    return 64 * _MIB                     # conservative default (v7x); v5e/v6e have 128 MiB


def _pick_col_tile(C, HW, io_dtype, budget_bytes):
    """Largest spatial (lane) tile, multiple of 128, fitting the VMEM byte budget."""
    if HW <= 128:
        return HW                        # full-extent block is always legal
    io_b = jnp.dtype(io_dtype).itemsize
    io_sub = max(1, 32 // io_b)
    # Per spatial column: map-in + out + mask (8 sublane-padded rows), all double-buffered,
    # plus ~3 live f32 [C, S] compute temporaries inside the kernel body.
    per_col = 2 * (2 * _round_up(C, io_sub) * io_b + 8 * io_b) + 3 * C * 4
    # Grid-invariant residents (conv weight, bias, txt), still double-buffered by the pipeline.
    fixed = 2 * (_block_bytes(C, C, jnp.float32) + 2 * _block_bytes(C, 1, jnp.float32))
    max_cols = max(128, (budget_bytes - fixed) // per_col)
    col_tile = max((max_cols // 128) * 128, 128)
    if col_tile >= HW:
        return HW                        # single full-extent spatial block
    return col_tile


def easy_fusion_pallas(textual_input, map_h_nchw, map_mask_nchw,
                       w_lin, b_lin, w_conv, b_conv):
    """textual_input: [B, T]; map_h_nchw: [B, C, H, W]; map_mask_nchw: [B, 1, H, W].
    w_lin: [C, T] (nn.Linear.weight); b_lin: [C]
    w_conv: [C, C, 1, 1] (nn.Conv2d.weight); b_conv: [C]
    Returns fused_h in NCHW: [B, C, H, W], in map_h's dtype (pass bf16 to halve HBM traffic)."""
    B, _T = textual_input.shape
    _, C, H, W = map_h_nchw.shape
    HW = H * W
    io_dtype = map_h_nchw.dtype

    phys_vmem = _physical_vmem_bytes()
    budget = max(24 * _MIB, phys_vmem // 2)        # ~32 MiB on v7x, ~64 MiB on v5e/v6e
    col_tile = _pick_col_tile(C, HW, io_dtype, budget)
    n_col = pl.cdiv(HW, col_tile)

    # tex_linear hoisted: one batched XLA GEMM instead of an M=1 MXU pass per grid step.
    txt_h = (textual_input.astype(jnp.float32) @ w_lin.astype(jnp.float32).T
             + b_lin.astype(jnp.float32))                          # [B, C]
    txt_h = txt_h[:, :, None]                                      # [B, C, 1]

    # NCHW kept native: [B,C,H,W] -> [B,C,HW] is a free reshape (no transpose traffic).
    # map/mask keep the caller's dtype end-to-end; f32 stays exact, bf16 halves bytes.
    map_flat = map_h_nchw.reshape(B, C, HW)
    mask_flat = map_mask_nchw.reshape(B, 1, HW).astype(io_dtype)
    wc = w_conv.reshape(C, C).astype(jnp.float32)                  # [C_out, C_in]
    bc = b_conv.reshape(C, 1).astype(jnp.float32)

    # VMEM estimate: double-buffered I/O blocks + grid-invariant operands (padded) +
    # f32 kernel temporaries.
    vmem_need = (2 * (_block_bytes(C, col_tile, io_dtype)          # map in
                      + _block_bytes(1, col_tile, io_dtype)        # mask in
                      + _block_bytes(C, col_tile, io_dtype))       # out
                 + 3 * _block_bytes(C, col_tile, jnp.float32)      # kernel temporaries
                 + 2 * (_block_bytes(C, C, jnp.float32)            # conv weight (x2 buffers)
                        + 2 * _block_bytes(C, 1, jnp.float32)))    # bias + txt (x2 buffers)
    # TODO(synk): for very large C (f32 [C,C] weight no longer fits next to the spatial
    # tile on v7x's 64 MiB VMEM) add a K-tiled accumulator grid axis and/or single-buffer
    # the weight (pl.Buffered(1)) instead of relying on this clamp.
    vmem_limit = int(min(phys_vmem - 4 * _MIB,
                         max(32 * _MIB, vmem_need + 8 * _MIB)))

    out = pl.pallas_call(
        _fusion_kernel,
        out_shape=jax.ShapeDtypeStruct((B, C, HW), io_dtype),
        grid_spec=pltpu.PrefetchScalarGridSpec(
            num_scalar_prefetch=0,
            grid=(B, n_col),
            in_specs=[
                pl.BlockSpec((None, C, 1), lambda b, s: (b, 0, 0)),          # txt_h
                pl.BlockSpec((None, C, col_tile), lambda b, s: (b, 0, s)),   # map
                pl.BlockSpec((None, 1, col_tile), lambda b, s: (b, 0, s)),   # mask
                pl.BlockSpec((C, C), lambda b, s: (0, 0)),                   # conv weight
                pl.BlockSpec((C, 1), lambda b, s: (0, 0)),                   # conv bias
            ],
            out_specs=pl.BlockSpec((None, C, col_tile), lambda b, s: (b, 0, s)),
        ),
        compiler_params=pltpu.CompilerParams(
            dimension_semantics=("parallel", "parallel"),
            vmem_limit_bytes=vmem_limit),
    )(txt_h, map_flat, mask_flat, wc, bc)

    return out.reshape(B, C, H, W)


def easy_fusion_ref(textual_input, map_h_nchw, map_mask_nchw,
                    w_lin, b_lin, w_conv, b_conv):
    """Pure-JAX reference matching the PyTorch forward (NCHW)."""
    C = w_conv.shape[0]
    txt = textual_input @ w_lin.T + b_lin                          # [B, C]
    txt = txt[:, :, None, None]                                    # [B, C, 1, 1]
    vis = jnp.einsum('bihw,oi->bohw', map_h_nchw, w_conv.reshape(C, C)) \
        + b_conv[None, :, None, None]
    prod = txt * vis
    denom = jnp.maximum(jnp.sqrt(jnp.sum(prod * prod, axis=1, keepdims=True)), 1e-12)
    return (prod / denom) * map_mask_nchw


if __name__ == "__main__":
    B, C, T, H, W = 2, 32, 32, 8, 8
    key = jax.random.PRNGKey(0)
    k1, k2, k3, k4, k5, k6, k7 = jax.random.split(key, 7)

    textual_input = jax.random.normal(k1, (B, T), dtype=jnp.float32)
    map_h = jax.random.normal(k2, (B, C, H, W), dtype=jnp.float32)
    map_mask = (jax.random.uniform(k3, (B, 1, H, W)) > 0.3).astype(jnp.float32)

    # deterministic parameter init (shapes from nn.Linear / nn.Conv2d)
    w_lin = jax.random.normal(k4, (C, T), dtype=jnp.float32) * 0.05
    b_lin = jax.random.normal(k5, (C,), dtype=jnp.float32) * 0.05
    w_conv = jax.random.normal(k6, (C, C, 1, 1), dtype=jnp.float32) * 0.05
    b_conv = jax.random.normal(k7, (C,), dtype=jnp.float32) * 0.05

    # f32 path: bit-accurate against the pure-JAX reference.
    out = easy_fusion_pallas(textual_input, map_h, map_mask,
                             w_lin, b_lin, w_conv, b_conv)
    out = jax.block_until_ready(out)

    ref = easy_fusion_ref(textual_input, map_h, map_mask,
                          w_lin, b_lin, w_conv, b_conv)
    assert out.shape == (B, C, H, W)
    assert jnp.allclose(out, ref, atol=1e-5, rtol=1e-5)

    # bf16 I/O smoke test (halves HBM traffic; f32 accumulation inside the kernel).
    out_bf16 = easy_fusion_pallas(textual_input,
                                  map_h.astype(jnp.bfloat16),
                                  map_mask.astype(jnp.bfloat16),
                                  w_lin, b_lin, w_conv, b_conv)
    out_bf16 = jax.block_until_ready(out_bf16)
    assert out_bf16.shape == (B, C, H, W)
    assert out_bf16.dtype == jnp.bfloat16
    assert bool(jnp.all(jnp.isfinite(out_bf16.astype(jnp.float32))))

    print("KERNEL_OK")
</pallas_src>

<mosaic_0001>
module attributes {stable_mosaic.version = 11 : i64} {
  func.func @_fusion_kernel(%arg0: i32, %arg1: i32, %arg2: memref<1x32x1xf32, #tpu.memory_space<vmem>>, %arg3: memref<1x32x64xf32, #tpu.memory_space<vmem>>, %arg4: memref<1x1x64xf32, #tpu.memory_space<vmem>>, %arg5: memref<32x32xf32, #tpu.memory_space<vmem>>, %arg6: memref<32x1xf32, #tpu.memory_space<vmem>>, %arg7: memref<1x32x64xf32, #tpu.memory_space<vmem>>) attributes {dimension_semantics = [#tpu.dimension_semantics<parallel>, #tpu.dimension_semantics<parallel>], iteration_bounds = array<i64: 2, 1>, scalar_prefetch = 0 : i64, scratch_operands = 0 : i64, tpu.core_type = #tpu.core_type<tc>, window_params = [{transform_indices = @transform_0, window_bounds = array<i64: 1, 32, 1>}, {transform_indices = @transform_1, window_bounds = array<i64: 1, 32, 64>}, {transform_indices = @transform_2, window_bounds = array<i64: 1, 1, 64>}, {pipeline_mode = #tpu.pipeline_mode<synchronous>, transform_indices = @transform_3, window_bounds = array<i64: 32, 32>}, {pipeline_mode = #tpu.pipeline_mode<synchronous>, transform_indices = @transform_4, window_bounds = array<i64: 32, 1>}, {transform_indices = @transform_5, window_bounds = array<i64: 1, 32, 64>}]} {
    %c0 = arith.constant 0 : index
    %c0_0 = arith.constant 0 : index
    %c0_1 = arith.constant 0 : index
    %0 = vector.load %arg3[%c0, %c0_0, %c0_1] : memref<1x32x64xf32, #tpu.memory_space<vmem>>, vector<1x32x64xf32>
    %1 = vector.shape_cast %0 : vector<1x32x64xf32> to vector<32x64xf32>
    %c0_2 = arith.constant 0 : index
    %c0_3 = arith.constant 0 : index
    %2 = vector.load %arg5[%c0_2, %c0_3] : memref<32x32xf32, #tpu.memory_space<vmem>>, vector<32x32xf32>
    %cst = arith.constant dense<0.000000e+00> : vector<32x64xf32>
    %3 = tpu.matmul %2, %1, %cst {dimension_numbers = #tpu.dot_dimension_numbers<[1], [0], [0], [1], [0, 0, 1, 1], [], []>} : vector<32x32xf32>, vector<32x64xf32>, vector<32x64xf32> -> vector<32x64xf32>
    %c0_4 = arith.constant 0 : index
    %c0_5 = arith.constant 0 : index
    %4 = vector.load %arg6[%c0_4, %c0_5] : memref<32x1xf32, #tpu.memory_space<vmem>>, vector<32x1xf32>
    %5 = vector.broadcast %4 : vector<32x1xf32> to vector<32x64xf32>
    %6 = arith.addf %3, %5 : vector<32x64xf32>
    %c0_6 = arith.constant 0 : index
    %c0_7 = arith.constant 0 : index
    %c0_8 = arith.constant 0 : index
    %7 = vector.load %arg2[%c0_6, %c0_7, %c0_8] : memref<1x32x1xf32, #tpu.memory_space<vmem>>, vector<1x32x1xf32>
    %8 = vector.shape_cast %7 : vector<1x32x1xf32> to vector<32x1xf32>
    %9 = vector.broadcast %8 : vector<32x1xf32> to vector<32x64xf32>
    %10 = arith.mulf %9, %6 : vector<32x64xf32>
    %11 = arith.mulf %10, %10 : vector<32x64xf32>
    %cst_9 = arith.constant dense<0.000000e+00> : vector<64xf32>
    %12 = vector.multi_reduction <add>, %11, %cst_9 [0] : vector<32x64xf32> to vector<64xf32>
    %13 = vector.shape_cast %12 : vector<64xf32> to vector<1x64xf32>
    %cst_10 = arith.constant 1.000000e-24 : f32
    %14 = vector.broadcast %cst_10 : f32 to vector<1x64xf32>
    %15 = arith.maximumf %13, %14 : vector<1x64xf32>
    %16 = math.rsqrt %15 : vector<1x64xf32>
    %c0_11 = arith.constant 0 : index
    %c0_12 = arith.constant 0 : index
    %c0_13 = arith.constant 0 : index
    %17 = vector.load %arg4[%c0_11, %c0_12, %c0_13] : memref<1x1x64xf32, #tpu.memory_space<vmem>>, vector<1x1x64xf32>
    %18 = vector.shape_cast %17 : vector<1x1x64xf32> to vector<1x64xf32>
    %19 = arith.mulf %16, %18 : vector<1x64xf32>
    %20 = vector.broadcast %19 : vector<1x64xf32> to vector<32x64xf32>
    %21 = arith.mulf %10, %20 : vector<32x64xf32>
    %c0_14 = arith.constant 0 : index
    %c0_15 = arith.constant 0 : index
    %c0_16 = arith.constant 0 : index
    %22 = vector.load %arg7[%c0_14, %c0_15, %c0_16] : memref<1x32x64xf32, #tpu.memory_space<vmem>>, vector<1x32x64xf32>
    %23 = vector.shape_cast %22 : vector<1x32x64xf32> to vector<32x64xf32>
    %24 = vector.shape_cast %21 : vector<32x64xf32> to vector<1x32x64xf32>
    tpu.vector_store %arg7[%c0_14, %c0_15, %c0_16], %24 {strides = array<i32>} : memref<1x32x64xf32, #tpu.memory_space<vmem>>, vector<1x32x64xf32>,
    return
  }
  func.func @transform_0(%arg0: i32, %arg1: i32) -> (i32, i32, i32) {
    %c0_i32 = arith.constant 0 : i32
    %c0_i32_0 = arith.constant 0 : i32
    %c0_i32_1 = arith.constant 0 : i32
    return %arg0, %c0_i32, %c0_i32_0 : i32, i32, i32
  }
  func.func @transform_1(%arg0: i32, %arg1: i32) -> (i32, i32, i32) {
    %c0_i32 = arith.constant 0 : i32
    %c0_i32_0 = arith.constant 0 : i32
    return %arg0, %c0_i32, %arg1 : i32, i32, i32
  }
  func.func @transform_2(%arg0: i32, %arg1: i32) -> (i32, i32, i32) {
    %c0_i32 = arith.constant 0 : i32
    %c0_i32_0 = arith.constant 0 : i32
    return %arg0, %c0_i32, %arg1 : i32, i32, i32
  }
  func.func @transform_3(%arg0: i32, %arg1: i32) -> (i32, i32) {
    %c0_i32 = arith.constant 0 : i32
    %c0_i32_0 = arith.constant 0 : i32
    %c0_i32_1 = arith.constant 0 : i32
    return %c0_i32, %c0_i32_0 : i32, i32
  }
  func.func @transform_4(%arg0: i32, %arg1: i32) -> (i32, i32) {
    %c0_i32 = arith.constant 0 : i32
    %c0_i32_0 = arith.constant 0 : i32
    %c0_i32_1 = arith.constant 0 : i32
    return %c0_i32, %c0_i32_0 : i32, i32
  }
  func.func @transform_5(%arg0: i32, %arg1: i32) -> (i32, i32, i32) {
    %c0_i32 = arith.constant 0 : i32
    %c0_i32_0 = arith.constant 0 : i32
    return %arg0, %c0_i32, %arg1 : i32, i32, i32
  }
}

</mosaic_0001>

<bundles_post_ra>
// kernel: tpu_custom_call.1
= control target key start
LH: loop header
LB: loop body
LE: loop exit
PB: predicated region body
PF: predicated region fallthrough
CT: control target
= control target key end

     0   :  { %10 = vsyncpa [#allocation3], 0  ;;  %s988_s0 = inlined_call_operand.vmem [shape: f32[2,32,1], index: 0, kind: input, shape index: {}]   ;;  %s989_s1 = inlined_call_operand.vmem [shape: f32[2,32,64], index: 1, kind: input, shape index: {}]   ;;  %s990_s2 = inlined_call_operand.vmem [shape: f32[2,1,64], index: 2, kind: input, shape index: {}]   ;;  %s991_s3 = inlined_call_operand.vmem [shape: f32[32,32], index: 3, kind: input, shape index: {}]   ;;  %s992_s4 = inlined_call_operand.vmem [shape: f32[32,1], index: 4, kind: input, shape index: {}]   ;;  %s993_s5 = inlined_call_operand.hbm [shape: f32[2,32,64], index: 5, kind: output, shape index: {}]  }
   0x1   :  { %12 = vsyncpa [#allocation3 + $0x1], 0  ;;  %s828_s18 = smov 0   ;;  %s830_s19 = smov 0  }
   0x2   :  { %s832_s20 = smov 0   ;;  %s834_s21 = smov 0  }
   0x3   :  { %s836_s22 = smov 0   ;;  %s838_s23 = smov 0  }
   0x4 LB: > { %s602_s24 = sadd.s32 4294967295, %s792_s23   ;;  %s603_s25 = sadd.s32 4294967294, %s792_s23   ;;  %s792_s23 = sphi %s838_s23, %s18_s23   ;;  %s788_s22 = sphi %s836_s22, %s1000_s22   ;;  %s784_s21 = sphi %s834_s21, %s999_s21   ;;  %s780_s20 = sphi %s832_s20, %s998_s20   ;;  %s776_s19 = sphi %s830_s19, %s997_s19   ;;  %s772_s18 = sphi %s828_s18, %s996_s18  }
   0x5   : > { %s30_s26 = sadd.s32 1, %s788_s22  ;;  %s163_s27 = sadd.s32 1, %s780_s20 }
   0x6   : > { %p32_p0 = scmp.ge.s32.totalorder %s30_s26, 2  ;;  %p173_p1 = scmp.ne.s32.totalorder %s780_s20, %s776_s19 }
   0x7   : > { %p174_p2 = scmp.eq.s32.totalorder %s602_s24, 1  ;;  %p179_p3 = scmp.ne.s32.totalorder %s776_s19, %s772_s18 }
   0x8   : > { %s1002_s26 = smov (%p32_p0, %s30_s26), 0  ;;  %p180_p5 = scmp.eq.s32.totalorder %s603_s25, 1 }
   0x9   : > { %p868_p4 = por %p174_p2, %p173_p1  ;;  %s158_s29 = ssub.s32 %s788_s22, %s1002_s26 }
   0xa   : > { %p606_p6 = scmp.ge.s32.totalorder %s792_s23, 1  ;;  %p161_p7 = scmp.eq.s32.totalorder %s158_s29, 0 }
   0xb   : > { %p875_p8 = por %p180_p5, %p179_p3  ;;  %p232_p9 = scmp.lt.s32.totalorder %s792_s23, 3 }
   0xc   : > { %s881_s6 = scalar_select %p161_p7, %s780_s20, %s163_s27  }
   0xd   : > { %p233_p10 = pnand %p606_p6, %p232_p9 }
   0xe   : > { %p274_p11 = scmp.lt.s32.totalorder (!%p233_p10), %s784_s21, 1  ;;  %s271_s17 = sand.u32 (!%p233_p10), 1, %s776_s19  }
   0xf   : > { %236 = sbr.rel (%p233_p10) target bundleno = 290 (0x122), region = 40  ;;  %s607_s29 = sshll.u32 (!%p233_p10), %s271_s17, 5 }
  0x10   : > { %s273_s8 = scalar_lea.vmem (!%p233_p10), [#allocation2], %s607_s29  ;;  %s795_s13 = smov (!%p233_p10), [#allocation2]  }
  0x11   : > { %s500_s9 = sshll.u32 (!%p233_p10), %s273_s8, 4  ;;  %s720_s14 = sshll.u32 (!%p233_p10), %s795_s13, 4  ;;  %s937_s9 = int_to_ptr.vmem [resolvable:$true] %s500_s9  ;;  %s721_s14 = int_to_ptr.vmem [resolvable:$false] %s720_s14 }
  0x12   : > { %p723_p1 = scmp.lt.s32.totalorder (!%p233_p10), %s937_s9, %s721_s14 }
  0x14   : > { %v297_v0 = vld [vmem:[%s991_s3] sm:$0xff]  ;;  %vm325_vm0 = vcmask 261120   ;;  %v299_v1 = vld [vmem:[%s991_s3 + $0x10] sm:$0xff]  ;;  %s899_s15 = scalar_select %p274_p11, %s784_s21, 1  ;;  %v794_v4 = vmov 0   ;;  %v298_v9 = vld [vmem:[%s991_s3 + $0x8] sm:$0xff]  ;;  %v473_v55 = vlaneseq }
  0x15   : > { %640 = vmatprep.mubr.msk.f32.mxu0 %vm325_vm0, %v297_v0  ;;  %643 = vmatprep.mubr.msk.f32.mxu1 %vm325_vm0, %v299_v1  ;;  %v301_v2 = vld [vmem:[%s992_s4] sm:$0xff]  ;;  %v303_v3 = vld [vmem:[%s992_s4 + $0x10] sm:$0xff]  ;;  %v300_v10 = vld [vmem:[%s991_s3 + $0x18] sm:$0xff]  ;;  %vm455_vm1 = vcmask 523264  }
  0x16   : > { %712 = vset.pattern.permute.xlu0 %v794_v4  ;;  %713 = vset.pattern.permute.xlu1 %v794_v4  ;;  %s621_s16 = sshll.u32 %s899_s15, 5  ;;  %v302_v11 = vld [vmem:[%s992_s4 + $0x8] sm:$0xff]  ;;  %v304_v14 = vld [vmem:[%s992_s4 + $0x18] sm:$0xff]  ;;  %s292_s27 = scalar_lea.vmem %s990_s2, %s899_s15  ;;  %v474_v56 = vshrl.u32 %v473_v55, 7 }
  0x17   : > { %307 = vperm.xlu0 %712, %v301_v2   ;;  %317 = vperm.xlu1 %713, %v303_v3   ;;  %s286_s25 = scalar_lea.vmem %s989_s1, %s621_s16  ;;  %s278_s7 = scalar_lea.vmem %s988_s0, %s621_s16  ;;  %v471_v57 = vld [vmem:[%s292_s27] sm:$0x1] }
  0x18   : > { %v296_v5 = vld [vmem:[%s286_s25 + $0x18] sm:$0xff]  ;;  %v295_v6 = vld [vmem:[%s286_s25 + $0x10] sm:$0xff]  ;;  %v294_v7 = vld [vmem:[%s286_s25 + $0x8] sm:$0xff]  ;;  %v475_v58 = vsub.s32 0, %v474_v56  ;;  %s716_s15 = scalar_lea.vmem %s937_s9, 512  ;;  %s722_s16 = scalar_lea.vmem %s721_s14, 1024 }
  0x19   : > { %632 = vmatprep.subr.mxu0 %v296_v5  ;;  %646 = vmatprep.subr.mxu1 %v296_v5  ;;  %v293_v8 = vld [vmem:[%s286_s25] sm:$0xff]  ;;  %v424_v13 = vld [vmem:[%s278_s7 + $0x8] sm:$0xff]  ;;  %v425_v15 = vld [vmem:[%s278_s7 + $0x10] sm:$0xff]  ;;  %p717_p12 = scmp.ne.s32.totalorder %s937_s9, %s716_s15  ;;  %p724_p2 = scmp.lt.s32.totalorder %s722_s16, %s716_s15 }
  0x1a   : > { %633 = vmatpush3.msra.mxu0 %v296_v5  ;;  %650 = vmatpush3.msra.mxu1 %v296_v5  ;;  %v423_v12 = vld [vmem:[%s278_s7] sm:$0xff]  ;;  %v426_v16 = vld [vmem:[%s278_s7 + $0x18] sm:$0xff]  ;;  %s623_s7 = sshll.u32 %s784_s21, 9  ;;  %s943_s21 = scalar_lea.sflag [#allocation3], %s271_s17 }
  0x1b   : > { %634 = vmatprep.subr.mxu0 %v295_v6  ;;  %647 = vmatprep.subr.mxu1 %v295_v6  ;;  %s935_s12 = scalar_lea.hbm %s993_s5, %s623_s7  ;;  %p718_p13 = pnand %p717_p12, %p868_p4 }
  0x1c   : > { %635 = vmatpush3.msra.mxu0 %v295_v6  ;;  %651 = vmatpush3.msra.mxu1 %v295_v6  ;;  %p725_p3 = por %p724_p2, %p723_p1 }
  0x1d   : > { %636 = vmatprep.subr.mxu0 %v294_v7  ;;  %648 = vmatprep.subr.mxu1 %v294_v7  ;;  %p719_p0 = pneg %p718_p13 }
  0x1e   : > { %637 = vmatpush3.msra.mxu0 %v294_v7  ;;  %652 = vmatpush3.msra.mxu1 %v294_v7 }
  0x1f   : > { %638 = vmatprep.subr.mxu0 %v293_v8  ;;  %649 = vmatprep.subr.mxu1 %v293_v8  ;;  %p726_p5 = pnand %p725_p3, %p719_p0 }
  0x20   : > { %639 = vmatpush3.msra.mxu0 %v293_v8  ;;  %653 = vmatpush3.msra.mxu1 %v293_v8 }
  0x21   : > { %641 = vmatmul.mubr.msk.f32.vlgmr.msra.gmra.mxu0 %vm325_vm0, %v298_v9  ;;  %644 = vmatmul.mubr.msk.f32.vlgmr.msra.gmra.mxu1 %vm325_vm0, %v300_v10 }
  0x22   : > { %312 = vperm.xlu0 %712, %v302_v11   ;;  %429 = vperm.xlu1 %713, %v423_v12  }
  0x26   : > { %434 = vperm.xlu0 %712, %v424_v13   ;;  %322 = vperm.xlu1 %713, %v304_v14  }
  0x2a   : > { %439 = vperm.xlu0 %712, %v425_v15   ;;  %444 = vperm.xlu1 %713, %v426_v16  }
  0x92   : > { %v308_v17 = vpop.permute.xlu0 %307  ;;  %v318_v18 = vpop.permute.xlu1 %317 }
  0x9d   : > { %v313_v19 = vpop.permute.xlu0 %312  ;;  %v430_v20 = vpop.permute.xlu1 %429 }
  0xa1   : > { %v435_v21 = vpop.permute.xlu0 %434  ;;  %v323_v22 = vpop.permute.xlu1 %322 }
  0xa5   : > { %v440_v32 = vpop.permute.xlu0 %439  ;;  %v445_v33 = vpop.permute.xlu1 %444 }
  0xe1   : > { %v642_v23 = vpop.f32.mrf.mxu0  ;;  %v645_v24 = vpop.f32.mrf.mxu1 }
  0xe2   : > { %v410_v25 = vadd.f32 %v642_v23, %v313_v19  ;;  %v420_v26 = vadd.f32 %v645_v24, %v323_v22 }
  0xe3   : > { %v404_v27 = vpop.f32.mrf.mxu0  ;;  %v414_v28 = vpop.f32.mrf.mxu1 }
  0xe4   : > { %v448_v29 = vmul.f32 %v435_v21, %v410_v25  ;;  %v405_v30 = vadd.f32 %v404_v27, %v308_v17  ;;  %v415_v31 = vadd.f32 %v414_v28, %v318_v18  ;;  %v450_v35 = vmul.f32 %v445_v33, %v420_v26 }
  0xe6   : > { %v452_v34 = vmul.f32 %v448_v29, %v448_v29  ;;  %v447_v36 = vmul.f32 %v430_v20, %v405_v30  ;;  %v449_v37 = vmul.f32 %v440_v32, %v415_v31  ;;  %v454_v41 = vmul.f32 %v450_v35, %v450_v35 }
  0xe8   : > { %v451_v38 = vmul.f32 %v447_v36, %v447_v36  ;;  %v453_v39 = vmul.f32 %v449_v37, %v449_v37  ;;  %v457_v40 = vsel %vm455_vm1, %v452_v34, 0.0  ;;  %v461_v46 = vsel %vm455_vm1, %v454_v41, 0.0 }
  0xea   : > { %v456_v42 = vsel %vm455_vm1, %v451_v38, 0.0  ;;  %v459_v44 = vsel %vm455_vm1, %v453_v39, 0.0 }
  0xeb   : > { %v458_v43 = vadd.f32 %v457_v40, %v456_v42 }
  0xed   : > { %v460_v45 = vadd.f32 %v459_v44, %v458_v43 }
  0xef   : > { %v462_v47 = vadd.f32 %v461_v46, %v460_v45 }
  0xf1   : > { %v463_v48 = vrot.slane %v462_v47, 4 }
  0xf3   : > { %v464_v49 = vadd.f32 %v463_v48, %v462_v47 }
  0xf5   : > { %v465_v50 = vrot.slane %v464_v49, 2 }
  0xf7   : > { %v466_v51 = vadd.f32 %v465_v50, %v464_v49 }
  0xf9   : > { %v467_v52 = vrot.slane %v466_v51, 1 }
  0xfb   : > { %v468_v53 = vadd.f32 %v467_v52, %v466_v51 }
  0xfd   : > { %v469_v54 = vmax.f32 %v468_v53, 1e-24 }
  0xff   : > { %714 = vrsqrt.f32 %v469_v54 }
 0x10c   : > { %v715_v59 = vpop.eup %714 }
 0x10d   : > { %v472_v60 = vmul.f32 %v715_v59, %v471_v57 }
 0x10f   : > { %v476_v61 = vrot.slane %v472_v60, %v475_v58 }
 0x111   : > { %v477_v62 = vmul.f32 %v476_v61, %v447_v36  ;;  %v478_v63 = vmul.f32 %v476_v61, %v448_v29  ;;  %v479_v0 = vmul.f32 %v476_v61, %v449_v37  ;;  %v480_v1 = vmul.f32 %v476_v61, %v450_v35 }
 0x113   : > { %483 = vst.msk [vmem:[%s273_s8 + $0x10] sm:$0xff] %vm455_vm1, %v479_v0  ;;  %481 = vst.msk [vmem:[%s273_s8] sm:$0xff] %vm455_vm1, %v477_v62 }
 0x114   : > { %482 = vst.msk [vmem:[%s273_s8 + $0x8] sm:$0xff] %vm455_vm1, %v478_v63  ;;  %484 = vst.msk [vmem:[%s273_s8 + $0x18] sm:$0xff] %vm455_vm1, %v480_v1 }
 0x115   : > { %729 = shalt.err (!%p726_p5)
}
 0x116   : > { %s730_s17 = scalar_lea.hbm %s935_s12, 512  ;;  %s734_s27 = scalar_lea.hbm %s993_s5, 1024 }
 0x117   : > { %p731_p6 = scmp.ne.s32.totalorder %s935_s12, %s730_s17  ;;  %p735_p10 = scmp.lt.s32.totalorder %s935_s12, %s993_s5 }
 0x118   : > { %p736_p11 = scmp.lt.s32.totalorder %s734_s27, %s730_s17 }
 0x119   : > { %p732_p7 = pnand %p731_p6, %p868_p4 }
 0x11a   : > { %p737_p12 = por %p736_p11, %p735_p10 }
 0x11b   : > { %p733_p9 = pneg %p732_p7 }
 0x11d   : > { %p738_p13 = pnand %p737_p12, %p733_p9 }
 0x11f   : > { %741 = shalt.err (!%p738_p13)
}
 0x120   : > { %s796_s8 = smov 128   ;;  %s797_s10 = smov 8  }
 0x121   : > { %654 = dma.vmem_to_hbm [thread:$0]  (%p868_p4), %s937_s9, 512, %s935_s12, %s943_s21, %s796_s8, %s796_s8, %s797_s10  }
 0x122 PF: > { %p660_p0 = scmp.ge.s32.totalorder %s792_s23, 2  ;;  %s515_s11 = sand.u32 1, %s772_s18  }
 0x123   : > { %s516_s15 = scalar_lea.sflag [#allocation3], %s515_s11 }
 0x124   : > { %p657_p1 = pnand %p660_p0, %p875_p8 }
 0x126   : > { %p658_p2 = pneg %p657_p1 }
 0x128   : > { %767 = dma.done.wait (%p658_p2), %s516_s15, 512  }
 0x129   : > { %769 = vsyncadd (%p658_p2), %s516_s15, 4294966784  ;;  %s18_s23 = sadd.s32 1, %s792_s23   ;;  %s996_s18 = smov %s776_s19 }
 0x12a   : > { %p15_p3 = scmp.ge.s32.totalorder %s18_s23, 4   ;;  %s997_s19 = smov %s780_s20 }
 0x12b   : > { %s998_s20 = smov %s881_s6  ;;  %s999_s21 = smov %s788_s22 }
 0x12c   : > { %s1000_s22 = smov %s1002_s26  ;;  %17 = sbr.rel (!%p15_p3) target bundleno = 4 (0x4), region = 81 }
 0x131   :  { %521 = vsyncpa [#allocation3], 1 }
 0x132   :  { %523 = vsyncpa [#allocation3 + $0x1], 1 }

</bundles_post_ra>
